<compile_context>
chip_gen: v7x
topology: tpu7x:2x2x1
jax: 0.10.0
libtpu: 0.0.40
codegen_flags: <defaults>
</compile_context>

<pallas_src>
import functools

import jax
import jax.numpy as jnp
from jax.experimental import pallas as pl
from jax.experimental.pallas import tpu as pltpu


def attention_kernel(x_ref, gamma_ref, beta_ref, wq_ref, wkv_ref, wo_ref,
                     bo_ref, o_ref, ln_scr, kv_scr, q_scr, oh_scr,
                     *, heads, dim_head, q_tile, eps):
    qi = pl.program_id(1)
    inner = heads * dim_head

    # ---- Once per batch element: LayerNorm + grouped K/V projection, kept
    #      resident in bf16 VMEM scratch across all q-tile steps.
    @pl.when(qi == 0)
    def _():
        x = x_ref[0].astype(jnp.float32)                          # (N, D) f32
        mean = jnp.mean(x, axis=-1, keepdims=True)
        cen = x - mean
        var = jnp.mean(cen * cen, axis=-1, keepdims=True)
        ln = (cen * jax.lax.rsqrt(var + eps)
              * gamma_ref[...].astype(jnp.float32)
              + beta_ref[...].astype(jnp.float32))                # (N, D)
        ln_bf = ln.astype(jnp.bfloat16)
        ln_scr[...] = ln_bf
        # One lane-dense matmul for K and V of all heads: (N, D) @ (D, 2*inner)
        kv_scr[...] = jnp.dot(ln_bf, wkv_ref[...],
                              preferred_element_type=jnp.float32
                              ).astype(jnp.bfloat16)              # (N, 2*inner)

    # ---- Per q tile: grouped Q projection, per-head softmax attention,
    #      single fused output projection.
    row0 = pl.multiple_of(qi * q_tile, q_tile)
    ln_q = ln_scr[pl.ds(row0, q_tile), :]                         # (TQ, D) bf16
    # Q for all heads at once; 1/sqrt(dh) already folded into wq (wrapper).
    q_scr[...] = jnp.dot(ln_q, wq_ref[...],
                         preferred_element_type=jnp.float32
                         ).astype(jnp.bfloat16)                   # (TQ, inner)

    # Static unroll over heads (heads is small); per-head state lives in VMEM
    # scratch slices, so vreg live ranges stay bounded.
    for h in range(heads):
        c0 = h * dim_head
        q_h = q_scr[:, c0:c0 + dim_head]                          # (TQ, dh)
        k_h = kv_scr[:, c0:c0 + dim_head]                         # (N, dh)
        v_h = kv_scr[:, inner + c0:inner + c0 + dim_head]         # (N, dh)
        # Q @ K^T without materializing a transpose: contract over dim_head.
        dots = jax.lax.dot_general(
            q_h, k_h, (((1,), (1,)), ((), ())),
            preferred_element_type=jnp.float32)                   # (TQ, N) f32
        dots = dots - jnp.max(dots, axis=-1, keepdims=True)
        e = jnp.exp(dots)                                         # f32 (v5e-safe)
        attn = e * pl.reciprocal(jnp.sum(e, axis=-1, keepdims=True),
                                 approx=True)
        out_h = jnp.dot(attn.astype(jnp.bfloat16), v_h,
                        preferred_element_type=jnp.float32)       # (TQ, dh)
        oh_scr[:, c0:c0 + dim_head] = out_h.astype(jnp.bfloat16)

    # Single output projection over the full inner dim: (TQ, inner)@(inner, D).
    y = (jnp.dot(oh_scr[...], wo_ref[...], preferred_element_type=jnp.float32)
         + bo_ref[...].astype(jnp.float32))                       # (TQ, D)
    o_ref[0] = y.astype(o_ref.dtype)


def attention_forward(x, gamma, beta, w_qkv, w_out, b_out, *,
                      heads, dim_head, q_tile=256):
    B, N, D = x.shape
    inner = heads * dim_head
    scale = dim_head ** (-0.5)

    tq = N if N < q_tile else q_tile
    assert N % tq == 0, "sequence length must be divisible by the q tile"
    n_q_tiles = N // tq

    # Pre-split weights in the wrapper: Q weight separate (scale folded in),
    # K|V weights fused into one lane-dense (D, 2*inner) matrix.  bf16 halves
    # weight DMA bytes and runs the MXU at full rate (f32 accumulation).
    w_q = (w_qkv[:, :inner] * scale).astype(jnp.bfloat16)           # (D, inner)
    w_kv = w_qkv[:, inner:].astype(jnp.bfloat16)                    # (D, 2*inner)
    w_o = w_out.astype(jnp.bfloat16)                                # (inner, D)

    gamma2 = gamma.reshape(1, D).astype(jnp.float32)
    beta2 = beta.reshape(1, D).astype(jnp.float32)
    bout2 = b_out.reshape(1, D).astype(jnp.float32)
    x_bf = x.astype(jnp.bfloat16)          # LN math is done in f32 in-kernel

    kernel = functools.partial(attention_kernel, heads=heads,
                               dim_head=dim_head, q_tile=tq, eps=1e-5)

    const = lambda b, qi: (0, 0)
    # Constant-index blocks never re-DMA -> single-buffer them to halve their
    # VMEM footprint (decisive on v7x's 64 MiB / TensorCore).
    single = pl.Buffered(1)

    return pl.pallas_call(
        kernel,
        out_shape=jax.ShapeDtypeStruct((B, N, D), x.dtype),
        grid_spec=pltpu.PrefetchScalarGridSpec(
            num_scalar_prefetch=0,
            grid=(B, n_q_tiles),
            in_specs=[
                pl.BlockSpec((1, N, D), lambda b, qi: (b, 0, 0)),    # x (bf16, full seq)
                pl.BlockSpec((1, D), const, pipeline_mode=single),   # gamma
                pl.BlockSpec((1, D), const, pipeline_mode=single),   # beta
                pl.BlockSpec((D, inner), const, pipeline_mode=single),      # w_q (scaled)
                pl.BlockSpec((D, 2 * inner), const, pipeline_mode=single),  # w_k | w_v
                pl.BlockSpec((inner, D), const, pipeline_mode=single),      # w_out
                pl.BlockSpec((1, D), const, pipeline_mode=single),   # b_out
            ],
            out_specs=pl.BlockSpec((1, tq, D), lambda b, qi: (b, qi, 0)),
            scratch_shapes=[
                pltpu.VMEM((N, D), jnp.bfloat16),           # LayerNorm(x)
                pltpu.VMEM((N, 2 * inner), jnp.bfloat16),   # K | V (lane-dense)
                pltpu.VMEM((tq, inner), jnp.bfloat16),      # Q, all heads
                pltpu.VMEM((tq, inner), jnp.bfloat16),      # attn @ V, all heads
            ],
        ),
        compiler_params=pltpu.CompilerParams(
            # batch axis: megacore-parallel; q-tile axis: sequential so the
            # LN / K/V scratch written at qi == 0 is reused by later q tiles.
            dimension_semantics=("parallel", "arbitrary"),
            vmem_limit_bytes=64 * 1024 * 1024,
        ),
    )(x_bf, gamma2, beta2, w_q, w_kv, w_o, bout2)


def attention_reference(x, gamma, beta, w_qkv, w_out, b_out, *, heads, dim_head):
    """Pure-JAX f32 reference mirroring the PyTorch module (eval mode)."""
    B, N, D = x.shape
    inner = heads * dim_head
    scale = dim_head ** (-0.5)
    mean = jnp.mean(x, axis=-1, keepdims=True)
    var = jnp.mean((x - mean) ** 2, axis=-1, keepdims=True)
    ln = (x - mean) / jnp.sqrt(var + 1e-5) * gamma + beta
    qkv = ln @ w_qkv                                      # (B, N, 3*inner)
    q, k, v = jnp.split(qkv, 3, axis=-1)

    def split_heads(t):
        return t.reshape(B, N, heads, dim_head).transpose(0, 2, 1, 3)

    q, k, v = map(split_heads, (q, k, v))
    dots = jnp.einsum("bhnd,bhmd->bhnm", q, k) * scale
    attn = jax.nn.softmax(dots, axis=-1)
    out = jnp.einsum("bhnm,bhmd->bhnd", attn, v)
    out = out.transpose(0, 2, 1, 3).reshape(B, N, inner)
    return out @ w_out + b_out


if __name__ == "__main__":
    # Small shapes consistent with the module.
    B, N, D = 2, 8, 32
    heads, dim_head = 4, 16
    inner = heads * dim_head

    key = jax.random.PRNGKey(0)
    kx, kg, kb, kq, kw, kbo = jax.random.split(key, 6)

    x = jax.random.normal(kx, (B, N, D), dtype=jnp.float32)
    gamma = jnp.ones((D,), jnp.float32) + 0.1 * jax.random.normal(kg, (D,), jnp.float32)
    beta = 0.1 * jax.random.normal(kb, (D,), jnp.float32)
    w_qkv = 0.1 * jax.random.normal(kq, (D, 3 * inner), dtype=jnp.float32)
    w_out = 0.1 * jax.random.normal(kw, (inner, D), dtype=jnp.float32)
    b_out = 0.1 * jax.random.normal(kbo, (D,), dtype=jnp.float32)

    y = attention_forward(x, gamma, beta, w_qkv, w_out, b_out,
                          heads=heads, dim_head=dim_head)
    y = jax.block_until_ready(y)

    y_ref = attention_reference(x, gamma, beta, w_qkv, w_out, b_out,
                                heads=heads, dim_head=dim_head)
    # bf16 inputs/MXU operands + approx reciprocal => looser tolerance than f32.
    assert jnp.allclose(y, y_ref, atol=5e-2, rtol=5e-2), "mismatch vs reference"

    print("KERNEL_OK")
</pallas_src>

<mosaic_0001>
module attributes {stable_mosaic.version = 11 : i64} {
  func.func @attention_kernel(%arg0: i32, %arg1: i32, %arg2: memref<1x8x32xbf16, #tpu.memory_space<vmem>>, %arg3: memref<1x32xf32, #tpu.memory_space<vmem>>, %arg4: memref<1x32xf32, #tpu.memory_space<vmem>>, %arg5: memref<32x64xbf16, #tpu.memory_space<vmem>>, %arg6: memref<32x128xbf16, #tpu.memory_space<vmem>>, %arg7: memref<64x32xbf16, #tpu.memory_space<vmem>>, %arg8: memref<1x32xf32, #tpu.memory_space<vmem>>, %arg9: memref<1x8x32xf32, #tpu.memory_space<vmem>>, %arg10: memref<8x32xbf16, #tpu.memory_space<vmem>>, %arg11: memref<8x128xbf16, #tpu.memory_space<vmem>>, %arg12: memref<8x64xbf16, #tpu.memory_space<vmem>>, %arg13: memref<8x64xbf16, #tpu.memory_space<vmem>>) attributes {dimension_semantics = [#tpu.dimension_semantics<parallel>, #tpu.dimension_semantics<arbitrary>], iteration_bounds = array<i64: 2, 1>, scalar_prefetch = 0 : i64, scratch_operands = 4 : i64, tpu.core_type = #tpu.core_type<tc>, window_params = [{transform_indices = @transform_0, window_bounds = array<i64: 1, 8, 32>}, {pipeline_mode = #tpu.pipeline_mode<synchronous>, transform_indices = @transform_1, window_bounds = array<i64: 1, 32>}, {pipeline_mode = #tpu.pipeline_mode<synchronous>, transform_indices = @transform_2, window_bounds = array<i64: 1, 32>}, {pipeline_mode = #tpu.pipeline_mode<synchronous>, transform_indices = @transform_3, window_bounds = array<i64: 32, 64>}, {pipeline_mode = #tpu.pipeline_mode<synchronous>, transform_indices = @transform_4, window_bounds = array<i64: 32, 128>}, {pipeline_mode = #tpu.pipeline_mode<synchronous>, transform_indices = @transform_5, window_bounds = array<i64: 64, 32>}, {pipeline_mode = #tpu.pipeline_mode<synchronous>, transform_indices = @transform_6, window_bounds = array<i64: 1, 32>}, {transform_indices = @transform_7, window_bounds = array<i64: 1, 8, 32>}]} {
    %c0_i32 = arith.constant 0 : i32
    %0 = arith.cmpi eq, %arg1, %c0_i32 : i32
    %1 = arith.extui %0 : i1 to i32
    %c0_i32_0 = arith.constant 0 : i32
    %2 = arith.cmpi ne, %1, %c0_i32_0 : i32
    scf.if %2 {
      %c0_56 = arith.constant 0 : index
      %c0_57 = arith.constant 0 : index
      %c0_58 = arith.constant 0 : index
      %92 = vector.load %arg2[%c0_56, %c0_57, %c0_58] : memref<1x8x32xbf16, #tpu.memory_space<vmem>>, vector<1x8x32xbf16>
      %93 = vector.shape_cast %92 : vector<1x8x32xbf16> to vector<8x32xbf16>
      %94 = arith.extf %93 : vector<8x32xbf16> to vector<8x32xf32>
      %cst_59 = arith.constant dense<0.000000e+00> : vector<8xf32>
      %95 = vector.multi_reduction <add>, %94, %cst_59 [1] : vector<8x32xf32> to vector<8xf32>
      %96 = vector.shape_cast %95 : vector<8xf32> to vector<8x1xf32>
      %cst_60 = arith.constant 3.200000e+01 : f32
      %97 = vector.broadcast %cst_60 : f32 to vector<8x1xf32>
      %98 = arith.divf %96, %97 : vector<8x1xf32>
      %99 = vector.broadcast %98 : vector<8x1xf32> to vector<8x32xf32>
      %100 = arith.subf %94, %99 : vector<8x32xf32>
      %101 = arith.mulf %100, %100 : vector<8x32xf32>
      %cst_61 = arith.constant dense<0.000000e+00> : vector<8xf32>
      %102 = vector.multi_reduction <add>, %101, %cst_61 [1] : vector<8x32xf32> to vector<8xf32>
      %103 = vector.shape_cast %102 : vector<8xf32> to vector<8x1xf32>
      %cst_62 = arith.constant 3.200000e+01 : f32
      %104 = vector.broadcast %cst_62 : f32 to vector<8x1xf32>
      %105 = arith.divf %103, %104 : vector<8x1xf32>
      %cst_63 = arith.constant 9.99999974E-6 : f32
      %106 = vector.broadcast %cst_63 : f32 to vector<8x1xf32>
      %107 = arith.addf %105, %106 : vector<8x1xf32>
      %108 = math.rsqrt %107 : vector<8x1xf32>
      %109 = vector.broadcast %108 : vector<8x1xf32> to vector<8x32xf32>
      %110 = arith.mulf %100, %109 : vector<8x32xf32>
      %c0_64 = arith.constant 0 : index
      %c0_65 = arith.constant 0 : index
      %111 = vector.load %arg3[%c0_64, %c0_65] : memref<1x32xf32, #tpu.memory_space<vmem>>, vector<1x32xf32>
      %112 = vector.broadcast %111 : vector<1x32xf32> to vector<8x32xf32>
      %113 = arith.mulf %110, %112 : vector<8x32xf32>
      %c0_66 = arith.constant 0 : index
      %c0_67 = arith.constant 0 : index
      %114 = vector.load %arg4[%c0_66, %c0_67] : memref<1x32xf32, #tpu.memory_space<vmem>>, vector<1x32xf32>
      %115 = vector.broadcast %114 : vector<1x32xf32> to vector<8x32xf32>
      %116 = arith.addf %113, %115 : vector<8x32xf32>
      %117 = arith.truncf %116 : vector<8x32xf32> to vector<8x32xbf16>
      %c0_68 = arith.constant 0 : index
      %c0_69 = arith.constant 0 : index
      %118 = vector.load %arg10[%c0_68, %c0_69] : memref<8x32xbf16, #tpu.memory_space<vmem>>, vector<8x32xbf16>
      tpu.vector_store %arg10[%c0_68, %c0_69], %117 {strides = array<i32>} : memref<8x32xbf16, #tpu.memory_space<vmem>>, vector<8x32xbf16>,
      %c0_70 = arith.constant 0 : index
      %c0_71 = arith.constant 0 : index
      %119 = vector.load %arg6[%c0_70, %c0_71] : memref<32x128xbf16, #tpu.memory_space<vmem>>, vector<32x128xbf16>
      %cst_72 = arith.constant dense<0.000000e+00> : vector<8x128xf32>
      %120 = tpu.matmul %117, %119, %cst_72 {dimension_numbers = #tpu.dot_dimension_numbers<[1], [0], [0], [1], [0, 0, 1, 1], [], []>} : vector<8x32xbf16>, vector<32x128xbf16>, vector<8x128xf32> -> vector<8x128xf32>
      %121 = arith.truncf %120 : vector<8x128xf32> to vector<8x128xbf16>
      %c0_73 = arith.constant 0 : index
      %c0_74 = arith.constant 0 : index
      %122 = vector.load %arg11[%c0_73, %c0_74] : memref<8x128xbf16, #tpu.memory_space<vmem>>, vector<8x128xbf16>
      tpu.vector_store %arg11[%c0_73, %c0_74], %121 {strides = array<i32>} : memref<8x128xbf16, #tpu.memory_space<vmem>>, vector<8x128xbf16>,
    } else {
    }
    %c8_i32 = arith.constant 8 : i32
    %3 = arith.muli %arg1, %c8_i32 : i32
    %4 = tpu.assume_multiple %3, 8 : i32
    %5 = arith.index_cast %4 : i32 to index
    %c0 = arith.constant 0 : index
    %6 = vector.load %arg10[%5, %c0] : memref<8x32xbf16, #tpu.memory_space<vmem>>, vector<8x32xbf16>
    %c0_1 = arith.constant 0 : index
    %c0_2 = arith.constant 0 : index
    %7 = vector.load %arg5[%c0_1, %c0_2] : memref<32x64xbf16, #tpu.memory_space<vmem>>, vector<32x64xbf16>
    %cst = arith.constant dense<0.000000e+00> : vector<8x64xf32>
    %8 = tpu.matmul %6, %7, %cst {dimension_numbers = #tpu.dot_dimension_numbers<[1], [0], [0], [1], [0, 0, 1, 1], [], []>} : vector<8x32xbf16>, vector<32x64xbf16>, vector<8x64xf32> -> vector<8x64xf32>
    %9 = arith.truncf %8 : vector<8x64xf32> to vector<8x64xbf16>
    %c0_3 = arith.constant 0 : index
    %c0_4 = arith.constant 0 : index
    %10 = vector.load %arg12[%c0_3, %c0_4] : memref<8x64xbf16, #tpu.memory_space<vmem>>, vector<8x64xbf16>
    tpu.vector_store %arg12[%c0_3, %c0_4], %9 {strides = array<i32>} : memref<8x64xbf16, #tpu.memory_space<vmem>>, vector<8x64xbf16>,
    %c0_5 = arith.constant 0 : index
    %c0_6 = arith.constant 0 : index
    %11 = vector.load %arg12[%c0_5, %c0_6] : memref<8x64xbf16, #tpu.memory_space<vmem>>, vector<8x16xbf16>
    %c0_7 = arith.constant 0 : index
    %c0_8 = arith.constant 0 : index
    %12 = vector.load %arg11[%c0_7, %c0_8] : memref<8x128xbf16, #tpu.memory_space<vmem>>, vector<8x16xbf16>
    %c0_9 = arith.constant 0 : index
    %c64 = arith.constant 64 : index
    %13 = vector.load %arg11[%c0_9, %c64] : memref<8x128xbf16, #tpu.memory_space<vmem>>, vector<8x16xbf16>
    %cst_10 = arith.constant dense<0.000000e+00> : vector<8x8xf32>
    %14 = tpu.matmul %11, %12, %cst_10 {dimension_numbers = #tpu.dot_dimension_numbers<[1], [1], [0], [0], [0, 0, 1, 0], [], []>} : vector<8x16xbf16>, vector<8x16xbf16>, vector<8x8xf32> -> vector<8x8xf32>
    %cst_11 = arith.constant dense<0xFF800000> : vector<8xf32>
    %15 = vector.multi_reduction <maximumf>, %14, %cst_11 [1] : vector<8x8xf32> to vector<8xf32>
    %16 = vector.shape_cast %15 : vector<8xf32> to vector<8x1xf32>
    %17 = vector.broadcast %16 : vector<8x1xf32> to vector<8x8xf32>
    %18 = arith.subf %14, %17 : vector<8x8xf32>
    %19 = math.exp %18 : vector<8x8xf32>
    %cst_12 = arith.constant dense<0.000000e+00> : vector<8xf32>
    %20 = vector.multi_reduction <add>, %19, %cst_12 [1] : vector<8x8xf32> to vector<8xf32>
    %21 = vector.shape_cast %20 : vector<8xf32> to vector<8x1xf32>
    %22 = tpu.reciprocal %21 {approx = true} : vector<8x1xf32> -> vector<8x1xf32>
    %23 = vector.broadcast %22 : vector<8x1xf32> to vector<8x8xf32>
    %24 = arith.mulf %19, %23 : vector<8x8xf32>
    %25 = arith.truncf %24 : vector<8x8xf32> to vector<8x8xbf16>
    %cst_13 = arith.constant dense<0.000000e+00> : vector<8x16xf32>
    %26 = tpu.matmul %25, %13, %cst_13 {dimension_numbers = #tpu.dot_dimension_numbers<[1], [0], [0], [1], [0, 0, 1, 1], [], []>} : vector<8x8xbf16>, vector<8x16xbf16>, vector<8x16xf32> -> vector<8x16xf32>
    %27 = arith.truncf %26 : vector<8x16xf32> to vector<8x16xbf16>
    %c0_14 = arith.constant 0 : index
    %c0_15 = arith.constant 0 : index
    %28 = vector.load %arg13[%c0_14, %c0_15] : memref<8x64xbf16, #tpu.memory_space<vmem>>, vector<8x16xbf16>
    tpu.vector_store %arg13[%c0_14, %c0_15], %27 {strides = array<i32>} : memref<8x64xbf16, #tpu.memory_space<vmem>>, vector<8x16xbf16>,
    %c0_16 = arith.constant 0 : index
    %c16 = arith.constant 16 : index
    %29 = vector.load %arg12[%c0_16, %c16] : memref<8x64xbf16, #tpu.memory_space<vmem>>, vector<8x16xbf16>
    %c0_17 = arith.constant 0 : index
    %c16_18 = arith.constant 16 : index
    %30 = vector.load %arg11[%c0_17, %c16_18] : memref<8x128xbf16, #tpu.memory_space<vmem>>, vector<8x16xbf16>
    %c0_19 = arith.constant 0 : index
    %c80 = arith.constant 80 : index
    %31 = vector.load %arg11[%c0_19, %c80] : memref<8x128xbf16, #tpu.memory_space<vmem>>, vector<8x16xbf16>
    %cst_20 = arith.constant dense<0.000000e+00> : vector<8x8xf32>
    %32 = tpu.matmul %29, %30, %cst_20 {dimension_numbers = #tpu.dot_dimension_numbers<[1], [1], [0], [0], [0, 0, 1, 0], [], []>} : vector<8x16xbf16>, vector<8x16xbf16>, vector<8x8xf32> -> vector<8x8xf32>
    %cst_21 = arith.constant dense<0xFF800000> : vector<8xf32>
    %33 = vector.multi_reduction <maximumf>, %32, %cst_21 [1] : vector<8x8xf32> to vector<8xf32>
    %34 = vector.shape_cast %33 : vector<8xf32> to vector<8x1xf32>
    %35 = vector.broadcast %34 : vector<8x1xf32> to vector<8x8xf32>
    %36 = arith.subf %32, %35 : vector<8x8xf32>
    %37 = math.exp %36 : vector<8x8xf32>
    %cst_22 = arith.constant dense<0.000000e+00> : vector<8xf32>
    %38 = vector.multi_reduction <add>, %37, %cst_22 [1] : vector<8x8xf32> to vector<8xf32>
    %39 = vector.shape_cast %38 : vector<8xf32> to vector<8x1xf32>
    %40 = tpu.reciprocal %39 {approx = true} : vector<8x1xf32> -> vector<8x1xf32>
    %41 = vector.broadcast %40 : vector<8x1xf32> to vector<8x8xf32>
    %42 = arith.mulf %37, %41 : vector<8x8xf32>
    %43 = arith.truncf %42 : vector<8x8xf32> to vector<8x8xbf16>
    %cst_23 = arith.constant dense<0.000000e+00> : vector<8x16xf32>
    %44 = tpu.matmul %43, %31, %cst_23 {dimension_numbers = #tpu.dot_dimension_numbers<[1], [0], [0], [1], [0, 0, 1, 1], [], []>} : vector<8x8xbf16>, vector<8x16xbf16>, vector<8x16xf32> -> vector<8x16xf32>
    %45 = arith.truncf %44 : vector<8x16xf32> to vector<8x16xbf16>
    %c0_24 = arith.constant 0 : index
    %c16_25 = arith.constant 16 : index
    %46 = vector.load %arg13[%c0_24, %c16_25] : memref<8x64xbf16, #tpu.memory_space<vmem>>, vector<8x16xbf16>
    tpu.vector_store %arg13[%c0_24, %c16_25], %45 {strides = array<i32>} : memref<8x64xbf16, #tpu.memory_space<vmem>>, vector<8x16xbf16>,
    %c0_26 = arith.constant 0 : index
    %c32 = arith.constant 32 : index
    %47 = vector.load %arg12[%c0_26, %c32] : memref<8x64xbf16, #tpu.memory_space<vmem>>, vector<8x16xbf16>
    %c0_27 = arith.constant 0 : index
    %c32_28 = arith.constant 32 : index
    %48 = vector.load %arg11[%c0_27, %c32_28] : memref<8x128xbf16, #tpu.memory_space<vmem>>, vector<8x16xbf16>
    %c0_29 = arith.constant 0 : index
    %c96 = arith.constant 96 : index
    %49 = vector.load %arg11[%c0_29, %c96] : memref<8x128xbf16, #tpu.memory_space<vmem>>, vector<8x16xbf16>
    %cst_30 = arith.constant dense<0.000000e+00> : vector<8x8xf32>
    %50 = tpu.matmul %47, %48, %cst_30 {dimension_numbers = #tpu.dot_dimension_numbers<[1], [1], [0], [0], [0, 0, 1, 0], [], []>} : vector<8x16xbf16>, vector<8x16xbf16>, vector<8x8xf32> -> vector<8x8xf32>
    %cst_31 = arith.constant dense<0xFF800000> : vector<8xf32>
    %51 = vector.multi_reduction <maximumf>, %50, %cst_31 [1] : vector<8x8xf32> to vector<8xf32>
    %52 = vector.shape_cast %51 : vector<8xf32> to vector<8x1xf32>
    %53 = vector.broadcast %52 : vector<8x1xf32> to vector<8x8xf32>
    %54 = arith.subf %50, %53 : vector<8x8xf32>
    %55 = math.exp %54 : vector<8x8xf32>
    %cst_32 = arith.constant dense<0.000000e+00> : vector<8xf32>
    %56 = vector.multi_reduction <add>, %55, %cst_32 [1] : vector<8x8xf32> to vector<8xf32>
    %57 = vector.shape_cast %56 : vector<8xf32> to vector<8x1xf32>
    %58 = tpu.reciprocal %57 {approx = true} : vector<8x1xf32> -> vector<8x1xf32>
    %59 = vector.broadcast %58 : vector<8x1xf32> to vector<8x8xf32>
    %60 = arith.mulf %55, %59 : vector<8x8xf32>
    %61 = arith.truncf %60 : vector<8x8xf32> to vector<8x8xbf16>
    %cst_33 = arith.constant dense<0.000000e+00> : vector<8x16xf32>
    %62 = tpu.matmul %61, %49, %cst_33 {dimension_numbers = #tpu.dot_dimension_numbers<[1], [0], [0], [1], [0, 0, 1, 1], [], []>} : vector<8x8xbf16>, vector<8x16xbf16>, vector<8x16xf32> -> vector<8x16xf32>
    %63 = arith.truncf %62 : vector<8x16xf32> to vector<8x16xbf16>
    %c0_34 = arith.constant 0 : index
    %c32_35 = arith.constant 32 : index
    %64 = vector.load %arg13[%c0_34, %c32_35] : memref<8x64xbf16, #tpu.memory_space<vmem>>, vector<8x16xbf16>
    tpu.vector_store %arg13[%c0_34, %c32_35], %63 {strides = array<i32>} : memref<8x64xbf16, #tpu.memory_space<vmem>>, vector<8x16xbf16>,
    %c0_36 = arith.constant 0 : index
    %c48 = arith.constant 48 : index
    %65 = vector.load %arg12[%c0_36, %c48] : memref<8x64xbf16, #tpu.memory_space<vmem>>, vector<8x16xbf16>
    %c0_37 = arith.constant 0 : index
    %c48_38 = arith.constant 48 : index
    %66 = vector.load %arg11[%c0_37, %c48_38] : memref<8x128xbf16, #tpu.memory_space<vmem>>, vector<8x16xbf16>
    %c0_39 = arith.constant 0 : index
    %c112 = arith.constant 112 : index
    %67 = vector.load %arg11[%c0_39, %c112] : memref<8x128xbf16, #tpu.memory_space<vmem>>, vector<8x16xbf16>
    %cst_40 = arith.constant dense<0.000000e+00> : vector<8x8xf32>
    %68 = tpu.matmul %65, %66, %cst_40 {dimension_numbers = #tpu.dot_dimension_numbers<[1], [1], [0], [0], [0, 0, 1, 0], [], []>} : vector<8x16xbf16>, vector<8x16xbf16>, vector<8x8xf32> -> vector<8x8xf32>
    %cst_41 = arith.constant dense<0xFF800000> : vector<8xf32>
    %69 = vector.multi_reduction <maximumf>, %68, %cst_41 [1] : vector<8x8xf32> to vector<8xf32>
    %70 = vector.shape_cast %69 : vector<8xf32> to vector<8x1xf32>
    %71 = vector.broadcast %70 : vector<8x1xf32> to vector<8x8xf32>
    %72 = arith.subf %68, %71 : vector<8x8xf32>
    %73 = math.exp %72 : vector<8x8xf32>
    %cst_42 = arith.constant dense<0.000000e+00> : vector<8xf32>
    %74 = vector.multi_reduction <add>, %73, %cst_42 [1] : vector<8x8xf32> to vector<8xf32>
    %75 = vector.shape_cast %74 : vector<8xf32> to vector<8x1xf32>
    %76 = tpu.reciprocal %75 {approx = true} : vector<8x1xf32> -> vector<8x1xf32>
    %77 = vector.broadcast %76 : vector<8x1xf32> to vector<8x8xf32>
    %78 = arith.mulf %73, %77 : vector<8x8xf32>
    %79 = arith.truncf %78 : vector<8x8xf32> to vector<8x8xbf16>
    %cst_43 = arith.constant dense<0.000000e+00> : vector<8x16xf32>
    %80 = tpu.matmul %79, %67, %cst_43 {dimension_numbers = #tpu.dot_dimension_numbers<[1], [0], [0], [1], [0, 0, 1, 1], [], []>} : vector<8x8xbf16>, vector<8x16xbf16>, vector<8x16xf32> -> vector<8x16xf32>
    %81 = arith.truncf %80 : vector<8x16xf32> to vector<8x16xbf16>
    %c0_44 = arith.constant 0 : index
    %c48_45 = arith.constant 48 : index
    %82 = vector.load %arg13[%c0_44, %c48_45] : memref<8x64xbf16, #tpu.memory_space<vmem>>, vector<8x16xbf16>
    tpu.vector_store %arg13[%c0_44, %c48_45], %81 {strides = array<i32>} : memref<8x64xbf16, #tpu.memory_space<vmem>>, vector<8x16xbf16>,
    %c0_46 = arith.constant 0 : index
    %c0_47 = arith.constant 0 : index
    %83 = vector.load %arg13[%c0_46, %c0_47] : memref<8x64xbf16, #tpu.memory_space<vmem>>, vector<8x64xbf16>
    %c0_48 = arith.constant 0 : index
    %c0_49 = arith.constant 0 : index
    %84 = vector.load %arg7[%c0_48, %c0_49] : memref<64x32xbf16, #tpu.memory_space<vmem>>, vector<64x32xbf16>
    %cst_50 = arith.constant dense<0.000000e+00> : vector<8x32xf32>
    %85 = tpu.matmul %83, %84, %cst_50 {dimension_numbers = #tpu.dot_dimension_numbers<[1], [0], [0], [1], [0, 0, 1, 1], [], []>} : vector<8x64xbf16>, vector<64x32xbf16>, vector<8x32xf32> -> vector<8x32xf32>
    %c0_51 = arith.constant 0 : index
    %c0_52 = arith.constant 0 : index
    %86 = vector.load %arg8[%c0_51, %c0_52] : memref<1x32xf32, #tpu.memory_space<vmem>>, vector<1x32xf32>
    %87 = vector.broadcast %86 : vector<1x32xf32> to vector<8x32xf32>
    %88 = arith.addf %85, %87 : vector<8x32xf32>
    %c0_53 = arith.constant 0 : index
    %c0_54 = arith.constant 0 : index
    %c0_55 = arith.constant 0 : index
    %89 = vector.load %arg9[%c0_53, %c0_54, %c0_55] : memref<1x8x32xf32, #tpu.memory_space<vmem>>, vector<1x8x32xf32>
    %90 = vector.shape_cast %89 : vector<1x8x32xf32> to vector<8x32xf32>
    %91 = vector.shape_cast %88 : vector<8x32xf32> to vector<1x8x32xf32>
    tpu.vector_store %arg9[%c0_53, %c0_54, %c0_55], %91 {strides = array<i32>} : memref<1x8x32xf32, #tpu.memory_space<vmem>>, vector<1x8x32xf32>,
    return
  }
  func.func @transform_0(%arg0: i32, %arg1: i32) -> (i32, i32, i32) {
    %c0_i32 = arith.constant 0 : i32
    %c0_i32_0 = arith.constant 0 : i32
    %c0_i32_1 = arith.constant 0 : i32
    return %arg0, %c0_i32, %c0_i32_0 : i32, i32, i32
  }
  func.func @transform_1(%arg0: i32, %arg1: i32) -> (i32, i32) {
    %c0_i32 = arith.constant 0 : i32
    %c0_i32_0 = arith.constant 0 : i32
    %c0_i32_1 = arith.constant 0 : i32
    return %c0_i32, %c0_i32_0 : i32, i32
  }
  func.func @transform_2(%arg0: i32, %arg1: i32) -> (i32, i32) {
    %c0_i32 = arith.constant 0 : i32
    %c0_i32_0 = arith.constant 0 : i32
    %c0_i32_1 = arith.constant 0 : i32
    return %c0_i32, %c0_i32_0 : i32, i32
  }
  func.func @transform_3(%arg0: i32, %arg1: i32) -> (i32, i32) {
    %c0_i32 = arith.constant 0 : i32
    %c0_i32_0 = arith.constant 0 : i32
    %c0_i32_1 = arith.constant 0 : i32
    return %c0_i32, %c0_i32_0 : i32, i32
  }
  func.func @transform_4(%arg0: i32, %arg1: i32) -> (i32, i32) {
    %c0_i32 = arith.constant 0 : i32
    %c0_i32_0 = arith.constant 0 : i32
    %c0_i32_1 = arith.constant 0 : i32
    return %c0_i32, %c0_i32_0 : i32, i32
  }
  func.func @transform_5(%arg0: i32, %arg1: i32) -> (i32, i32) {
    %c0_i32 = arith.constant 0 : i32
    %c0_i32_0 = arith.constant 0 : i32
    %c0_i32_1 = arith.constant 0 : i32
    return %c0_i32, %c0_i32_0 : i32, i32
  }
  func.func @transform_6(%arg0: i32, %arg1: i32) -> (i32, i32) {
    %c0_i32 = arith.constant 0 : i32
    %c0_i32_0 = arith.constant 0 : i32
    %c0_i32_1 = arith.constant 0 : i32
    return %c0_i32, %c0_i32_0 : i32, i32
  }
  func.func @transform_7(%arg0: i32, %arg1: i32) -> (i32, i32, i32) {
    %c0_i32 = arith.constant 0 : i32
    %c0_i32_0 = arith.constant 0 : i32
    return %arg0, %arg1, %c0_i32 : i32, i32, i32
  }
}

</mosaic_0001>

<bundles_post_ra>
// kernel: tpu_custom_call.1
= control target key start
LH: loop header
LB: loop body
LE: loop exit
PB: predicated region body
PF: predicated region fallthrough
CT: control target
= control target key end

     0   :  { %s2407_s0 = inlined_call_operand.hbm [shape: bf16[2,8,32], index: 0, kind: input, shape index: {}]   ;;  %s2408_s1 = inlined_call_operand.hbm [shape: f32[1,32], index: 1, kind: input, shape index: {}]   ;;  %s2409_s2 = inlined_call_operand.hbm [shape: f32[1,32], index: 2, kind: input, shape index: {}]   ;;  %s2410_s3 = inlined_call_operand.hbm [shape: bf16[32,64], index: 3, kind: input, shape index: {}]   ;;  %s2411_s4 = inlined_call_operand.hbm [shape: bf16[32,128], index: 4, kind: input, shape index: {}]   ;;  %s2412_s5 = inlined_call_operand.hbm [shape: bf16[64,32], index: 5, kind: input, shape index: {}]   ;;  %s2413_s6 = inlined_call_operand.hbm [shape: f32[1,32], index: 6, kind: input, shape index: {}]   ;;  %s2414_s7 = inlined_call_operand.hbm [shape: f32[2,8,32], index: 7, kind: output, shape index: {}]  }
   0x1   :  { %2420 = sst [smem:[#allocation24_spill]] %s2408_s1 }
   0x2   :  { %2421 = sst [smem:[#allocation25_spill]] %s2410_s3 }
   0x3   :  { %12 = vsyncpa [#allocation7], 0 }
   0x4   :  { %14 = vsyncpa [#allocation7 + $0x1], 0 }
   0x5   :  { %15 = vsyncpa [#allocation10], 0 }
   0x6   :  { %16 = vsyncpa [#allocation13], 0 }
   0x7   :  { %17 = vsyncpa [#allocation16], 0 }
   0x8   :  { %18 = vsyncpa [#allocation8], 0 }
   0x9   :  { %20 = vsyncpa [#allocation8 + $0x1], 0  ;;  %s1979_s24 = smov 0   ;;  %s1981_s25 = smov 0  }
   0xa   :  { %s1983_s26 = smov 0   ;;  %s1985_s27 = smov 0  }
   0xb   :  { %s1987_s28 = smov 0   ;;  %s1989_s29 = smov 0  }
   0xc LB: > { %s2418_s30 = sadd.s32 4294967295, %s1918_s29   ;;  %p1298_p0 = scmp.ge.s32.totalorder %s1918_s29, 1  ;;  %s1918_s29 = sphi %s1989_s29, %s26_s29   ;;  %s1914_s28 = sphi %s1987_s28, %s2444_s28   ;;  %s1910_s27 = sphi %s1985_s27, %s2443_s27   ;;  %s1906_s26 = sphi %s1983_s26, %s2442_s26   ;;  %s1902_s25 = sphi %s1981_s25, %s2441_s25   ;;  %s1898_s24 = sphi %s1979_s24, %s2440_s24  }
   0xd   : > { %p2013_p1 = scmp.eq.s32.totalorder %s2418_s30, 0  ;;  %p223_p2 = scmp.lt.s32.totalorder %s1918_s29, 3 }
   0xe   : > { %s1920_s10 = smov [#allocation9]   ;;  %s1921_s12 = smov [#allocation12]  }
   0xf   : > { %s2422_s8 = scalar_select %p2013_p1, 1, 0 }
  0x10   : > { %p2018_p3 = pnand %p1298_p0, %p223_p2  ;;  %s236_s11 = sshll.u32 %s1920_s10, 4  ;;  %s237_s11 = int_to_ptr.vmem [resolvable:$true] %s236_s11 }
  0x11   : > { %s257_s13 = sshll.u32 %s1921_s12, 4  ;;  %s1922_s15 = smov [#allocation15]   ;;  %s2031_s13 = int_to_ptr.vmem [resolvable:$true] %s257_s13 }
  0x12   : > { %s2423_s9 = scalar_select %p2018_p3, 1, 0 }
  0x13   : > { %p1487_p5 = pneg %p2018_p3  ;;  %s2033_s16 = sshll.u32 %s1922_s15, 4  ;;  %s284_s16 = int_to_ptr.vmem [resolvable:$true] %s2033_s16 }
  0x14   : > { %s2425_s1 = sld [smem:[#allocation24_spill]] }
  0x15   : > { %p2027_p6 = pnand %p1487_p5, %p2013_p1 }
  0x17   : > { %p2043_p8 = pneg %p2027_p6 }
  0x1a   : > { %s1626_s19 = scalar_lea.hbm %s2425_s1, 16 }
  0x1b   : > { %p1627_p7 = scmp.ne.s32.totalorder %s2425_s1, %s1626_s19  ;;  %p1633_p11 = scmp.lt.u32.totalorder %s1626_s19, %s2425_s1 }
  0x1d   : > { %p1629_p9 = pnand %p2043_p8, %p1627_p7 }
  0x1f   : > { %p1630_p10 = pneg %p1629_p9 }
  0x21   : > { %p1635_p12 = pnand %p1633_p11, %p1630_p10 }
  0x23   : > { %1638 = shalt.err (!%p1635_p12)
}
  0x24   : > { %s1639_s12 = scalar_lea.vmem %s237_s11, 16  ;;  %s1646_s15 = scalar_lea.vmem %s237_s11, 32 }
  0x25   : > { %p1640_p13 = scmp.ne.s32.totalorder %s237_s11, %s1639_s12  ;;  %p1647_p5 = scmp.lt.s32.totalorder %s237_s11, %s237_s11 }
  0x26   : > { %p1648_p4 = scmp.lt.s32.totalorder %s1646_s15, %s1639_s12 }
  0x27   : > { %p1642_p0 = pnand %p1640_p13, %p2043_p8 }
  0x28   : > { %p1649_p3 = por %p1648_p4, %p1647_p5 }
  0x29   : > { %p1643_p2 = pneg %p1642_p0 }
  0x2b   : > { %p1650_p1 = pnand %p1649_p3, %p1643_p2 }
  0x2d   : > { %1653 = shalt.err (!%p1650_p1)
}
  0x2e   : > { %1490 = dma.hbm_to_vmem [thread:$0]  (!%p2027_p6), %s2425_s1, 16, %s237_s11, [#allocation10]  }
  0x2f   : > { %s2427_s3 = sld [smem:[#allocation25_spill]] }
  0x35   : > { %s1654_s21 = scalar_lea.hbm %s2427_s3, 256 }
  0x36   : > { %p1655_p7 = scmp.ne.s32.totalorder %s2427_s3, %s1654_s21  ;;  %p1661_p1 = scmp.lt.u32.totalorder %s1654_s21, %s2427_s3 }
  0x38   : > { %p1657_p9 = pnand %p1655_p7, %p2043_p8 }
  0x3a   : > { %p1658_p4 = pneg %p1657_p9 }
  0x3c   : > { %p1663_p3 = pnand %p1661_p1, %p1658_p4 }
  0x3e   : > { %1666 = shalt.err (!%p1663_p3)
}
  0x3f   : > { %s1667_s11 = scalar_lea.vmem %s2031_s13, 256  ;;  %p1675_p13 = scmp.lt.s32.totalorder %s2031_s13, %s2031_s13 }
  0x40   : > { %p1668_p10 = scmp.ne.s32.totalorder %s2031_s13, %s1667_s11  ;;  %p1676_p0 = scmp.lt.s32.totalorder %s1667_s11, %s1667_s11 }
  0x42   : > { %p1670_p11 = pnand %p1668_p10, %p2043_p8  ;;  %p1677_p2 = por %p1676_p0, %p1675_p13 }
  0x44   : > { %p1671_p12 = pneg %p1670_p11 }
  0x46   : > { %p1678_p5 = pnand %p1677_p2, %p1671_p12 }
  0x48   : > { %1681 = shalt.err (!%p1678_p5)
}
  0x49   : > { %s1923_s17 = smov 64   ;;  %s1924_s18 = smov 4  }
  0x4a   : > { %1496 = dma.hbm_to_vmem [thread:$0]  (!%p2027_p6), %s2427_s3, 256, %s2031_s13, [#allocation13], %s1923_s17, %s1923_s17, %s1924_s18  }
  0x4b   : > { %s1682_s10 = scalar_lea.hbm %s2412_s5, 512 }
  0x4c   : > { %p1683_p7 = scmp.ne.s32.totalorder %s2412_s5, %s1682_s10  ;;  %p1689_p1 = scmp.lt.u32.totalorder %s1682_s10, %s2412_s5 }
  0x4e   : > { %p1685_p9 = pnand %p1683_p7, %p2043_p8 }
  0x50   : > { %p1686_p4 = pneg %p1685_p9 }
  0x52   : > { %p1691_p3 = pnand %p1689_p1, %p1686_p4 }
  0x54   : > { %1694 = shalt.err (!%p1691_p3)
}
  0x55   : > { %s1695_s19 = scalar_lea.vmem %s284_s16, 512  ;;  %p1703_p13 = scmp.lt.s32.totalorder %s284_s16, %s284_s16 }
  0x56   : > { %p1696_p10 = scmp.ne.s32.totalorder %s284_s16, %s1695_s19  ;;  %p1704_p0 = scmp.lt.s32.totalorder %s1695_s19, %s1695_s19 }
  0x58   : > { %p1698_p11 = pnand %p1696_p10, %p2043_p8  ;;  %p1705_p2 = por %p1704_p0, %p1703_p13 }
  0x5a   : > { %p1699_p12 = pneg %p1698_p11 }
  0x5c   : > { %p1706_p5 = pnand %p1705_p2, %p1699_p12 }
  0x5e   : > { %1709 = shalt.err (!%p1706_p5)
}
  0x5f   : > { %1502 = dma.hbm_to_vmem [thread:$0]  (!%p2027_p6), %s2412_s5, 512, %s284_s16, [#allocation16], %s1923_s17, %s1923_s17, %s1924_s18  }
  0x60   : > { %s1925_s20 = smov [#allocation11]   ;;  %s1926_s23 = smov [#allocation14]  }
  0x61   : > { %s247_s21 = sshll.u32 %s1925_s20, 4  ;;  %s270_s10 = sshll.u32 %s1926_s23, 4  ;;  %s248_s21 = int_to_ptr.vmem [resolvable:$true] %s247_s21  ;;  %s271_s10 = int_to_ptr.vmem [resolvable:$true] %s270_s10 }
  0x62   : > { %s1710_s11 = scalar_lea.hbm %s2409_s2, 16 }
  0x63   : > { %p1711_p7 = scmp.ne.s32.totalorder %s2409_s2, %s1710_s11  ;;  %p1717_p1 = scmp.lt.u32.totalorder %s1710_s11, %s2409_s2 }
  0x65   : > { %p1713_p9 = pnand %p1711_p7, %p2043_p8 }
  0x67   : > { %p1714_p4 = pneg %p1713_p9 }
  0x69   : > { %p1719_p3 = pnand %p1717_p1, %p1714_p4 }
  0x6b   : > { %1722 = shalt.err (!%p1719_p3)
}
  0x6c   : > { %s1723_s16 = scalar_lea.vmem %s248_s21, 16  ;;  %s1730_s13 = scalar_lea.vmem %s248_s21, 32 }
  0x6d   : > { %p1724_p10 = scmp.ne.s32.totalorder %s248_s21, %s1723_s16  ;;  %p1731_p13 = scmp.lt.s32.totalorder %s248_s21, %s248_s21 }
  0x6e   : > { %p1732_p0 = scmp.lt.s32.totalorder %s1730_s13, %s1723_s16 }
  0x6f   : > { %p1726_p11 = pnand %p1724_p10, %p2043_p8 }
  0x70   : > { %p1733_p2 = por %p1732_p0, %p1731_p13 }
  0x71   : > { %p1727_p12 = pneg %p1726_p11 }
  0x73   : > { %p1734_p5 = pnand %p1733_p2, %p1727_p12 }
  0x75   : > { %1737 = shalt.err (!%p1734_p5)
}
  0x76   : > { %1493 = dma.hbm_to_vmem [thread:$0]  (!%p2027_p6), %s2409_s2, 16, %s248_s21, [#allocation10]  }
  0x77   : > { %s1738_s12 = scalar_lea.hbm %s2411_s4, 256 }
  0x78   : > { %p1739_p7 = scmp.ne.s32.totalorder %s2411_s4, %s1738_s12  ;;  %p1745_p1 = scmp.lt.u32.totalorder %s1738_s12, %s2411_s4 }
  0x7a   : > { %p1741_p9 = pnand %p1739_p7, %p2043_p8 }
  0x7c   : > { %p1742_p4 = pneg %p1741_p9 }
  0x7e   : > { %p1747_p3 = pnand %p1745_p1, %p1742_p4 }
  0x80   : > { %1750 = shalt.err (!%p1747_p3)
}
  0x81   : > { %s1751_s16 = scalar_lea.vmem %s271_s10, 256  ;;  %p1759_p13 = scmp.lt.s32.totalorder %s271_s10, %s271_s10 }
  0x82   : > { %p1752_p10 = scmp.ne.s32.totalorder %s271_s10, %s1751_s16  ;;  %p1760_p0 = scmp.lt.s32.totalorder %s1751_s16, %s1751_s16 }
  0x84   : > { %p1754_p11 = pnand %p1752_p10, %p2043_p8  ;;  %p1761_p2 = por %p1760_p0, %p1759_p13 }
  0x86   : > { %p1755_p12 = pneg %p1754_p11 }
  0x88   : > { %p1762_p5 = pnand %p1761_p2, %p1755_p12 }
  0x8a   : > { %1765 = shalt.err (!%p1762_p5)
}
  0x8b   : > { %1499 = dma.hbm_to_vmem [thread:$0]  (!%p2027_p6), %s2411_s4, 256, %s271_s10, [#allocation13], %s1923_s17, %s1923_s17, %s1924_s18  }
  0x8c   : > { %s1927_s1 = smov [#allocation17]   ;;  %s1766_s12 = scalar_lea.hbm %s2413_s6, 16 }
  0x8d   : > { %s297_s20 = sshll.u32 %s1927_s1, 4  ;;  %p1767_p7 = scmp.ne.s32.totalorder %s2413_s6, %s1766_s12  ;;  %s298_s20 = int_to_ptr.vmem [resolvable:$true] %s297_s20 }
  0x8e   : > { %p1773_p1 = scmp.lt.u32.totalorder %s1766_s12, %s2413_s6 }
  0x8f   : > { %p1769_p9 = pnand %p1767_p7, %p2043_p8 }
  0x91   : > { %p1770_p4 = pneg %p1769_p9 }
  0x93   : > { %p1775_p3 = pnand %p1773_p1, %p1770_p4 }
  0x95   : > { %1778 = shalt.err (!%p1775_p3)
}
  0x96   : > { %s1779_s17 = scalar_lea.vmem %s298_s20, 16  ;;  %s1786_s18 = scalar_lea.vmem %s298_s20, 32 }
  0x97   : > { %p1780_p10 = scmp.ne.s32.totalorder %s298_s20, %s1779_s17  ;;  %p1787_p13 = scmp.lt.s32.totalorder %s298_s20, %s298_s20 }
  0x98   : > { %p1788_p0 = scmp.lt.s32.totalorder %s1786_s18, %s1779_s17 }
  0x99   : > { %p1782_p11 = pnand %p1780_p10, %p2043_p8 }
  0x9a   : > { %p1789_p2 = por %p1788_p0, %p1787_p13 }
  0x9b   : > { %p1783_p12 = pneg %p1782_p11 }
  0x9d   : > { %p1790_p5 = pnand %p1789_p2, %p1783_p12 }
  0x9f   : > { %1793 = shalt.err (!%p1790_p5)
}
  0xa0   : > { %1505 = dma.hbm_to_vmem [thread:$0]  (!%p2027_p6), %s2413_s6, 16, %s298_s20, [#allocation16]  }
  0xa1   : > { %s1297_s22 = sadd.s32 4294967294, %s1918_s29   ;;  %s38_s21 = sadd.s32 1, %s1914_s28 }
  0xa2   : > { %p40_p8 = scmp.ge.s32.totalorder %s38_s21, 2  ;;  %s45_s14 = sadd.s32 1, %s1906_s26 }
  0xa3   : > { %p52_p7 = scmp.ne.s32.totalorder %s1906_s26, %s1902_s25  ;;  %p53_p9 = scmp.eq.s32.totalorder %s1918_s29, 0 }
  0xa4   : > { %s2446_s21 = smov (%p40_p8, %s38_s21), 0  ;;  %p58_p1 = scmp.ne.s32.totalorder %s1902_s25, %s1898_s24 }
  0xa5   : > { %p2172_p4 = por %p53_p9, %p52_p7  ;;  %s42_s1 = ssub.s32 %s1914_s28, %s2446_s21 }
  0xa6   : > { %s2429_s20 = sadd.s32 4294967295, %s1918_s29   ;;  %p43_p3 = scmp.eq.s32.totalorder %s42_s1, 0 }
  0xa7   : > { %p210_p6 = scmp.eq.s32.totalorder %s2429_s20, 1  ;;  %p2430_p10 = scmp.ne.s32.totalorder %s2422_s8, 0 }
  0xa8   : > { %p216_p13 = scmp.eq.s32.totalorder %s1297_s22, 1  ;;  %p1520_p2 = scmp.lt.s32.totalorder %s1918_s29, 2 }
  0xa9   : > { %p2184_p11 = por %p2430_p10, %p58_p1  ;;  %p2188_p12 = por %p210_p6, %p52_p7 }
  0xaa   : > { %s2193_s12 = scalar_select %p43_p3, %s1906_s26, %s45_s14  }
  0xab   : > { %s2432_s23 = scalar_select %p2188_p12, 1, 0 }
  0xac   : > { %p2195_p0 = por %p216_p13, %p58_p1  ;;  %s308_s11 = sand.u32 1, %s1906_s26  }
  0xad   : > { %s1307_s19 = sshll.u32 %s1914_s28, 6  ;;  %s1306_s30 = sshll.u32 %s308_s11, 2 }
  0xae   : > { %s2433_s15 = scalar_select %p2195_p0, 1, 0 }
  0xaf   : > { %s2205_s10 = scalar_lea.hbm %s2407_s0, %s1307_s19  ;;  %s312_s16 = scalar_lea.vmem [#allocation6], %s1306_s30 }
  0xb0   : > { %s319_s22 = sshll.u32 %s312_s16, 4  ;;  %p2209_p5 = pnand %p1520_p2, %p2172_p4  ;;  %s2213_s22 = int_to_ptr.vmem [resolvable:$true] %s319_s22 }
  0xb1   : > { %s309_s1 = scalar_lea.sflag [#allocation7], %s308_s11  ;;  %s1794_s20 = scalar_lea.hbm %s2205_s10, 64 }
  0xb2   : > { %p1795_p8 = scmp.ne.s32.totalorder %s2205_s10, %s1794_s20  ;;  %p1796_p7 = pneg %p2209_p5 }
  0xb3   : > { %s1799_s13 = scalar_lea.hbm %s2407_s0, 128  ;;  %p1800_p4 = scmp.lt.u32.totalorder %s2205_s10, %s2407_s0 }
  0xb4   : > { %p1797_p9 = pnand %p1796_p7, %p1795_p8  ;;  %p1801_p6 = scmp.lt.u32.totalorder %s1799_s13, %s1794_s20 }
  0xb5   : > { %p1803_p10 = scmp.lt.u32.totalorder %s1794_s20, %s2205_s10 }
  0xb6   : > { %p1798_p1 = pneg %p1797_p9  ;;  %p1802_p3 = por %p1801_p6, %p1800_p4 }
  0xb8   : > { %p1804_p13 = por %p1803_p10, %p1802_p3 }
  0xba   : > { %p1805_p2 = pnand %p1804_p13, %p1798_p1 }
  0xbc   : > { %1808 = shalt.err (!%p1805_p2)
}
  0xbd   : > { %s1809_s11 = scalar_lea.vmem %s2213_s22, 64  ;;  %s1928_s16 = smov [#allocation6]  }
  0xbe   : > { %p1810_p8 = scmp.ne.s32.totalorder %s2213_s22, %s1809_s11  ;;  %s1814_s19 = sshll.u32 %s1928_s16, 4  ;;  %s1815_s19 = int_to_ptr.vmem [resolvable:$false] %s1814_s19 }
  0xbf   : > { %s1816_s30 = scalar_lea.vmem %s1815_s19, 128  ;;  %p1817_p12 = scmp.lt.s32.totalorder %s2213_s22, %s1815_s19 }
  0xc0   : > { %p1812_p9 = pnand %p1810_p8, %p1796_p7  ;;  %p1818_p4 = scmp.lt.s32.totalorder %s1816_s30, %s1809_s11 }
  0xc2   : > { %p1813_p0 = pneg %p1812_p9  ;;  %p1819_p6 = por %p1818_p4, %p1817_p12 }
  0xc4   : > { %p1820_p3 = pnand %p1819_p6, %p1813_p0 }
  0xc6   : > { %1823 = shalt.err (!%p1820_p3)
}
  0xc7   : > { %1509 = dma.hbm_to_vmem [thread:$0]  (!%p2209_p5), %s2205_s10, 64, %s2213_s22, %s309_s1  }
  0xc8   : > { %p2435_p1 = scmp.ne.s32.totalorder %s2423_s9, 0 }
  0xc9   : > { %s2243_s20 = sand.u32 (!%p2435_p1), 1, %s1902_s25  }
  0xca   : > { %328 = sbr.rel (%p2435_p1) target bundleno = 2029 (0x7ed), region = 48  ;;  %s1309_s13 = sshll.u32 (!%p2435_p1), %s2243_s20, 2 }
  0xcb   : > { %s331_s17 = scalar_lea.sflag (!%p2435_p1), [#allocation7], %s2243_s20  ;;  %s334_s18 = scalar_lea.vmem (!%p2435_p1), [#allocation6], %s1309_s13 }
  0xd1   : > { %1877 = dma.done.wait (%p2184_p11), %s331_s17, 64  }
  0xd2   : > { %1879 = vsyncadd (%p2184_p11), %s331_s17, 4294967232  ;;  %p2436_p12 = scmp.ne.s32.totalorder %s2422_s8, 0 }
  0xd4   : > { %1881 = dma.done.wait (%p2436_p12), [#allocation10], 32  }
  0xd5   : > { %1883 = vsyncadd (%p2436_p12), [#allocation10], 4294967264 }
  0xd6   : > { %1885 = dma.done.wait (%p2436_p12), [#allocation13], 512  }
  0xd7   : > { %1887 = vsyncadd (%p2436_p12), [#allocation13], 4294966784 }
  0xd8   : > { %1889 = dma.done.wait (%p2436_p12), [#allocation16], 528  }
  0xd9   : > { %1891 = vsyncadd (%p2436_p12), [#allocation16], 4294966768  ;;  %vm396_vm0 = vcmask 261120   ;;  %v394_v0 = vld [vmem:[%s334_s18] sm:$0xf]  ;;  %v1929_v9 = vmov 0.0  }
  0xda   : > { %v395_v1 = vunpack.c.l.bf16 %v394_v0  ;;  %v1593_v8 = vld [vmem:[#allocation14] sm:$0xff]   ;;  %1383 = vmatprep.subr.bf16.mxu1 %v1929_v9  ;;  %vm1930_vm1 = vmmov 0   ;;  %v1594_v10 = vld [vmem:[#allocation14 + $0x8] sm:$0xff]   ;;  %1399 = vmatprep.subr.bf16.mxu0 %v1929_v9  ;;  %vm428_vm2 = vcmask 257024   ;;  %v1595_v20 = vld [vmem:[#allocation12] sm:$0xff]   ;;  %vm558_vm3 = vcmask 519168  }
  0xdb   : > { %1387 = vmatprep.mubr.msk.bf16.mxu1 %vm1930_vm1, %v1929_v9  ;;  %1384 = vmatpush3.bf16.msra.mxu1 %v1593_v8  ;;  %v1317_v15 = vld [vmem:[#allocation9] ss:$0 sm:$0xff]  ;;  %v1318_v17 = vld [vmem:[#allocation11] ss:$0 sm:$0xff]  ;;  %v1596_v22 = vld [vmem:[#allocation12 + $0x8] sm:$0xff]   ;;  %vm562_vm4 = vcmask 130048  }
  0xdc   : > { %v397_v2 = vsel %vm396_vm0, %v395_v1, 0.0  ;;  %1385 = vmatprep.subr.bf16.mxu1 %v1929_v9  ;;  %1401 = vmatprep.mubr.msk.bf16.mxu0 %vm1930_vm1, %v1929_v9  ;;  %s1931_s8 = smov 96   ;;  %s1932_s9 = smov 112   ;;  %vm609_vm5 = vcmask 64512   ;;  %vm630_vm6 = vcmask 1043456   ;;  %vm675_vm7 = vcmask 125952  }
  0xdd   : > { %398 = vadd.xlane.f32.xlu0 %v397_v2  ;;  %s1933_s3 = smov 80   ;;  %s1934_s10 = smov 48   ;;  %vm802_vm8 = vcmask 257152   ;;  %vm929_vm9 = vcmask 388352   ;;  %vm1056_vm10 = vcmask 519552   ;;  %vm1098_vm11 = vcmask 523264  }
  0xde   : > { %s1935_s22 = smov 64   ;;  %s1936_s14 = smov 16  }
  0xdf   : > { %1386 = vmatpush3.bf16.msra.mxu1 %v1594_v10  ;;  %s1937_s1 = smov 32   ;;  %s1316_s11 = sshll.u32 %s2243_s20, 3 }
  0xe0   : > { %1391 = vmatprep.subr.bf16.mxu1 %v1929_v9  ;;  %s1350_s16 = sshll.u32 %s1910_s27, 7  ;;  %s388_s19 = scalar_lea.vmem [#allocation18], %s1316_s11 }
  0xe1   : > { %s1158_s30 = sshll.u32 %s388_s19, 4  ;;  %s2357_s18 = scalar_lea.hbm %s2414_s7, %s1350_s16  ;;  %s2359_s30 = int_to_ptr.vmem [resolvable:$true] %s1158_s30 }
  0xe2   : > { %s1144_s27 = scalar_lea.sflag [#allocation8], %s2243_s20  ;;  %p2437_p0 = scmp.ne.s32.totalorder %s2432_s23, 0 }
 0x16a   : > { %v399_v3 = vpop.xlane.xlu0 %398 }
 0x16b   : > { %v401_v4 = vmul.f32 0.03125, %v399_v3 }
 0x16d   : > { %v402_v5 = vsub.f32 %v395_v1, %v401_v4 }
 0x16f   : > { %v403_v6 = vmul.f32 %v402_v5, %v402_v5 }
 0x171   : > { %v404_v7 = vsel %vm396_vm0, %v403_v6, 0.0 }
 0x172   : > { %405 = vadd.xlane.f32.xlu0 %v404_v7 }
 0x1ff   : > { %v406_v11 = vpop.xlane.xlu0 %405 }
 0x200   : > { %v407_v12 = vmul.f32 0.03125, %v406_v11 }
 0x202   : > { %v408_v13 = vadd.f32 1e-05, %v407_v12 }
 0x204   : > { %1608 = vrsqrt.f32 %v408_v13 }
 0x20e   : > { %v1609_v14 = vpop.eup %1608 }
 0x20f   : > { %v410_v16 = vmul.f32 %v1609_v14, %v402_v5 }
 0x211   : > { %v418_v18 = vmul.f32 %v1317_v15, %v410_v16 }
 0x213   : > { %v426_v19 = vadd.f32 %v1318_v17, %v418_v18 }
 0x215   : > { %v427_v21 = vpack.c.bf16 %v426_v19, %v426_v19 }
 0x217   : > { %429 = vst.msk [vmem:[#allocation2] sm:$0xf] %vm428_vm2, %v427_v21  ;;  %1388 = vmatmul.mubr.msk.bf16.vlgmr.msra.gmra.mrb[0].mxu1 %vm396_vm0, %v427_v21 }
 0x218   : > { %1392 = vmatpush3.bf16.msra.mxu1 %v1595_v20  ;;  %1395 = vmatprep.mubr.msk.bf16.mxu1 %vm1930_vm1, %v1929_v9 }
 0x219   : > { %1393 = vmatprep.subr.bf16.mxu1 %v1929_v9 }
 0x21c   : > { %1394 = vmatpush3.bf16.msra.mxu1 %v1596_v22 }
 0x21d   : > { %1405 = vmatprep.subr.bf16.mxu1 %v1929_v9 }
 0x21e   : > { %v496_v23 = vld [vmem:[#allocation2] sm:$0xf] }
 0x21f   : > { %1396 = vmatmul.mubr.msk.bf16.vlgmr.msra.gmra.mrb[4].mxu1 %vm396_vm0, %v496_v23 }
 0x220   : > { %1407 = vmatprep.mubr.msk.bf16.mxu1 %vm1930_vm1, %v1929_v9 }
 0x2ea   : > { %v483_v24 = vpop.f32.mrb[0].mxu1 }
 0x2eb   : > { %v489_v25 = vpack.c.bf16 %v483_v24, %v483_v24  ;;  %v1389_v26 = vpop.f32.mrb[1].mxu1 }
 0x2ec   : > { %v486_v27 = vpop.f32.mrb[2].mxu1 }
 0x2ed   : > { %490 = vst [vmem:[#allocation3] sm:$0xf] %v489_v25  ;;  %v1390_v28 = vpop.f32.mrb[3].mxu1 }
 0x2f2   : > { %v551_v29 = vpop.f32.mrb[4].mxu1 }
 0x2f3   : > { %v557_v30 = vpack.c.bf16 %v551_v29, %v551_v29  ;;  %v1397_v31 = vpop.f32.mrb[5].mxu1 }
 0x2f4   : > { %v554_v32 = vpop.f32.mrb[6].mxu1  ;;  %v2281_v33 = vld [vmem:[#allocation3] sm:$0xf] }
 0x2f5   : > { %559 = vst.msk [vmem:[#allocation4] sm:$0xf] %vm558_vm3, %v557_v30  ;;  %v1398_v34 = vpop.f32.mrb[7].mxu1  ;;  %v567_v35 = vsel %vm562_vm4, %v2281_v33, 0  ;;  %v2285_v36 = vld [vmem:[#allocation3] ss:$0 sps:$4 sm:$0xff]   ;;  %v1326_v24 = vcombine.low %v2281_v33, %v2281_v33 }
 0x2f6   : > { %1400 = vmatpush3.bf16.xpose.msra.mxu0 %v567_v35  ;;  %v2287_v37 = vld [vmem:[#allocation3] ss:$0 sps:$4 sm:$0xff]   ;;  %814 = vrot.lane.b32.xlu0 %v2285_v36, %s1931_s8 }
 0x2f7   : > { %1411 = vmatprep.subr.bf16.mxu0 %v1929_v9  ;;  %687 = vrot.lane.b32.xlu1 %v2287_v37, %s1932_s9  ;;  %v2295_v41 = vld [vmem:[#allocation3] ss:$0 sps:$4 sm:$0xff]  }
 0x2fc   : > { %v560_v38 = vld [vmem:[#allocation4] sm:$0xf] }
 0x2fd   : > { %v1600_v39 = vld [vmem:[#allocation4] ss:$0 sps:$4 sm:$0xff]   ;;  %1402 = vmatmul.mubr.msk.bf16.vlgmr.msra.gmra.mrb[0].mxu0 %vm562_vm4, %v560_v38 }
 0x2fe   : > { %682 = vrot.lane.b32.xlu1 %v1600_v39, %s1932_s9  ;;  %1413 = vmatprep.mubr.msk.bf16.mxu0 %vm1930_vm1, %v1929_v9  ;;  %v1601_v40 = vld [vmem:[#allocation4] ss:$0 sps:$4 sm:$0xff]   ;;  %s1938_s9 = smov [#allocation18]  }
 0x2ff   : > { %v1603_v42 = vld [vmem:[#allocation4] ss:$0 sps:$4 sm:$0xff]  }
 0x302   : > { %809 = vrot.lane.b32.xlu1 %v1601_v40, %s1931_s8  ;;  %s1824_s8 = scalar_lea.vmem %s2359_s30, 128 }
 0x303   : > { %p1825_p11 = scmp.ne.s32.totalorder %s2359_s30, %s1824_s8 }
 0x305   : > { %p1826_p5 = pnand %p1825_p11, %p2437_p0 }
 0x306   : > { %941 = vrot.lane.b32.xlu1 %v2295_v41, %s1933_s3 }
 0x307   : > { %p1827_p7 = pneg %p1826_p5 }
 0x30a   : > { %936 = vrot.lane.b32.xlu1 %v1603_v42, %s1933_s3  ;;  %s1828_s3 = sshll.u32 %s1938_s9, 4  ;;  %s1829_s3 = int_to_ptr.vmem [resolvable:$false] %s1828_s3 }
 0x30b   : > { %p1831_p10 = scmp.lt.s32.totalorder %s2359_s30, %s1829_s3 }
 0x368   : > { %v815_v45 = vpop.permute.xlu0 %814 }
 0x369   : > { %v688_v43 = vpop.permute.xlu1 %687  ;;  %v820_v47 = vsel %vm562_vm4, %v815_v45, 0 }
 0x36a   : > { %v693_v44 = vsel %vm562_vm4, %v688_v43, 0 }
 0x36b   : > { %1412 = vmatpush3.bf16.xpose.msra.mxu0 %v693_v44 }
 0x36c   : > { %1423 = vmatprep.subr.bf16.mxu0 %v1929_v9 }
 0x370   : > { %v683_v46 = vpop.permute.xlu1 %682 }
 0x372   : > { %1414 = vmatmul.mubr.msk.bf16.vlgmr.msra.gmra.mrb[4].mxu0 %vm562_vm4, %v683_v46 }
 0x373   : > { %1424 = vmatpush3.bf16.xpose.msra.mxu0 %v820_v47  ;;  %1425 = vmatprep.mubr.msk.bf16.mxu0 %vm1930_vm1, %v1929_v9 }
 0x374   : > { %v810_v48 = vpop.permute.xlu1 %809  ;;  %1435 = vmatprep.subr.bf16.mxu0 %v1929_v9 }
 0x378   : > { %v942_v49 = vpop.permute.xlu1 %941 }
 0x379   : > { %v947_v50 = vsel %vm562_vm4, %v942_v49, 0 }
 0x37a   : > { %1426 = vmatmul.mubr.msk.bf16.vlgmr.msra.gmra.mrb[8].mxu0 %vm562_vm4, %v810_v48 }
 0x37b   : > { %1436 = vmatpush3.bf16.xpose.msra.mxu0 %v947_v50  ;;  %1437 = vmatprep.mubr.msk.bf16.mxu0 %vm1930_vm1, %v1929_v9 }
 0x37c   : > { %1447 = vmatprep.subr.bf16.mxu0 %v1929_v9  ;;  %v937_v51 = vpop.permute.xlu1 %936 }
 0x382   : > { %1438 = vmatmul.mubr.msk.bf16.vlgmr.msra.gmra.mrb[12].mxu0 %vm562_vm4, %v937_v51 }
 0x383   : > { %1455 = vmatprep.mubr.msk.bf16.mxu0 %vm1930_vm1, %v1929_v9 }
 0x3d0   : > { %v603_v52 = vpop.f32.mrb[0].mxu0 }
 0x3d1   : > { %v1403_v53 = vpop.f32.mrb[1].mxu0  ;;  %v610_v54 = vsel %vm609_vm5, %v603_v52, -inf }
 0x3d2   : > { %611 = vmax.xlane.f32.xlu1 %v610_v54  ;;  %v606_v55 = vpop.f32.mrb[2].mxu0 }
 0x3d3   : > { %v1404_v56 = vpop.f32.mrb[3].mxu0 }
 0x445   : > { %v729_v57 = vpop.f32.mrb[4].mxu0 }
 0x446   : > { %v1415_v58 = vpop.f32.mrb[5].mxu0  ;;  %v735_v59 = vsel %vm609_vm5, %v729_v57, -inf }
 0x447   : > { %736 = vmax.xlane.f32.xlu0 %v735_v59  ;;  %v732_v60 = vpop.f32.mrb[6].mxu0 }
 0x448   : > { %v1416_v61 = vpop.f32.mrb[7].mxu0 }
 0x44d   : > { %v856_v62 = vpop.f32.mrb[8].mxu0 }
 0x44e   : > { %v1427_v63 = vpop.f32.mrb[9].mxu0  ;;  %v862_v0 = vsel %vm609_vm5, %v856_v62, -inf }
 0x44f   : > { %863 = vmax.xlane.f32.xlu1 %v862_v0  ;;  %v859_v1 = vpop.f32.mrb[10].mxu0  ;;  %v1604_v0 = vld [vmem:[#allocation15] sm:$0xff]  }
 0x450   : > { %v1428_v2 = vpop.f32.mrb[11].mxu0  ;;  %1448 = vmatpush3.bf16.msra.mxu0 %v1604_v0  ;;  %v1605_v1 = vld [vmem:[#allocation15 + $0x8] sm:$0xff]  }
 0x451   : > { %1449 = vmatprep.subr.bf16.mxu0 %v1929_v9  ;;  %v1606_v2 = vld [vmem:[#allocation15 + $0x10] sm:$0xff]  }
 0x454   : > { %1450 = vmatpush3.bf16.msra.mxu0 %v1605_v1 }
 0x455   : > { %v983_v3 = vpop.f32.mrb[12].mxu0  ;;  %1451 = vmatprep.subr.bf16.mxu0 %v1929_v9 }
 0x456   : > { %v1439_v4 = vpop.f32.mrb[13].mxu0  ;;  %v989_v5 = vsel %vm609_vm5, %v983_v3, -inf }
 0x457   : > { %990 = vmax.xlane.f32.xlu1 %v989_v5  ;;  %v986_v6 = vpop.f32.mrb[14].mxu0 }
 0x458   : > { %v1440_v7 = vpop.f32.mrb[15].mxu0  ;;  %1452 = vmatpush3.bf16.msra.mxu0 %v1606_v2 }
 0x459   : > { %1453 = vmatprep.subr.bf16.mxu0 %v1929_v9 }
 0x45f   : > { %v612_v8 = vpop.xlane.xlu1 %611 }
 0x460   : > { %v613_v10 = vsub.f32 %v603_v52, %v612_v8 }
 0x462   : > { %v614_v11 = vmul.f32 1.442695, %v613_v10 }
 0x464   : > { %1610 = vpow2.f32 %v614_v11 }
 0x46e   : > { %v1611_v12 = vpop.eup %1610 }
 0x46f   : > { %v616_v13 = vsel %vm609_vm5, %v1611_v12, 0.0 }
 0x470   : > { %617 = vadd.xlane.f32.xlu0 %v616_v13 }
 0x4d4   : > { %v737_v14 = vpop.xlane.xlu0 %736 }
 0x4d5   : > { %v738_v15 = vsub.f32 %v729_v57, %v737_v14 }
 0x4d7   : > { %v739_v16 = vmul.f32 1.442695, %v738_v15 }
 0x4d9   : > { %1612 = vpow2.f32 %v739_v16 }
 0x4dc   : > { %v864_v17 = vpop.xlane.xlu1 %863 }
 0x4dd   : > { %v865_v18 = vsub.f32 %v856_v62, %v864_v17 }
 0x4df   : > { %v866_v19 = vmul.f32 1.442695, %v865_v18  ;;  %v1343_v18 = vld [vmem:[#allocation17] ss:$0 sm:$0xff] }
 0x4e1   : > { %1614 = vpow2.f32 %v866_v19 }
 0x4e3   : > { %v1613_v20 = vpop.eup %1612 }
 0x4e4   : > { %v741_v21 = vsel %vm609_vm5, %v1613_v20, 0.0  ;;  %v991_v25 = vpop.xlane.xlu1 %990 }
 0x4e5   : > { %742 = vadd.xlane.f32.xlu1 %v741_v21  ;;  %v992_v26 = vsub.f32 %v983_v3, %v991_v25  ;;  %v1607_v3 = vld [vmem:[#allocation15 + $0x18] sm:$0xff]  }
 0x4e6   : > { %1454 = vmatpush3.bf16.msra.mxu0 %v1607_v3 }
 0x4e7   : > { %v993_v27 = vmul.f32 1.442695, %v992_v26 }
 0x4e9   : > { %1616 = vpow2.f32 %v993_v27 }
 0x4eb   : > { %v1615_v22 = vpop.eup %1614 }
 0x4ec   : > { %v868_v23 = vsel %vm609_vm5, %v1615_v22, 0.0 }
 0x4ed   : > { %869 = vadd.xlane.f32.xlu0 %v868_v23 }
 0x4f3   : > { %v1617_v28 = vpop.eup %1616 }
 0x4f4   : > { %v995_v29 = vsel %vm609_vm5, %v1617_v28, 0.0 }
 0x4f6   : > { %747 = vrot.lane.b32.xlu1 %v2287_v37, %s1934_s10 }
 0x4fd   : > { %v618_v30 = vpop.xlane.xlu0 %617 }
 0x4fe   : > { %1618 = vrcp.f32 %v618_v30 }
 0x503   : > { %625 = vrot.lane.b32.xlu0 %v1326_v24, %s1935_s22 }
 0x507   : > { %1001 = vrot.lane.b32.xlu0 %v2295_v41, %s1936_s14 }
 0x508   : > { %v1619_v32 = vpop.eup %1618 }
 0x509   : > { %v620_v34 = vmul.f32 %v1619_v32, %v1611_v12 }
 0x50b   : > { %v621_v39 = vpack.c.bf16 %v620_v34, %v620_v34 }
 0x51a   : > { %996 = vadd.xlane.f32.xlu1 %v995_v29 }
 0x52b   : > { %874 = vrot.lane.b32.xlu1 %v2285_v36, %s1937_s1 }
 0x572   : > { %v743_v31 = vpop.xlane.xlu1 %742 }
 0x573   : > { %1620 = vrcp.f32 %v743_v31 }
 0x576   : > { %v748_v38 = vpop.permute.xlu1 %747 }
 0x577   : > { %v753_v41 = vsel %vm630_vm6, %v748_v38, 0 }
 0x57a   : > { %v870_v33 = vpop.xlane.xlu0 %869 }
 0x57b   : > { %1622 = vrcp.f32 %v870_v33 }
 0x57d   : > { %v1621_v40 = vpop.eup %1620 }
 0x57e   : > { %v626_v35 = vpop.permute.xlu0 %625  ;;  %v745_v36 = vmul.f32 %v1621_v40, %v1613_v20 }
 0x57f   : > { %v632_v37 = vsel %vm630_vm6, %v626_v35, 0 }
 0x580   : > { %1406 = vmatpush3.bf16.msra.mxu1 %v632_v37  ;;  %v746_v42 = vpack.c.bf16 %v745_v36, %v745_v36 }
 0x581   : > { %1417 = vmatprep.subr.bf16.mxu1 %v1929_v9 }
 0x582   : > { %v1002_v48 = vpop.permute.xlu0 %1001 }
 0x583   : > { %1408 = vmatmul.mubr.msk.bf16.vlgmr.msra.gmra.mrb[8].mxu1 %vm609_vm5, %v621_v39  ;;  %v1007_v50 = vsel %vm630_vm6, %v1002_v48, 0 }
 0x584   : > { %1418 = vmatpush3.bf16.msra.mxu1 %v753_v41  ;;  %1419 = vmatprep.mubr.msk.bf16.mxu1 %vm1930_vm1, %v1929_v9 }
 0x585   : > { %1429 = vmatprep.subr.bf16.mxu1 %v1929_v9  ;;  %v1623_v43 = vpop.eup %1622 }
 0x586   : > { %v872_v45 = vmul.f32 %v1623_v43, %v1615_v22 }
 0x588   : > { %v873_v49 = vpack.c.bf16 %v872_v45, %v872_v45 }
 0x58b   : > { %1420 = vmatmul.mubr.msk.bf16.vlgmr.msra.gmra.mrb[12].mxu1 %vm609_vm5, %v746_v42 }
 0x58c   : > { %1431 = vmatprep.mubr.msk.bf16.mxu1 %vm1930_vm1, %v1929_v9 }
 0x5a7   : > { %v997_v44 = vpop.xlane.xlu1 %996 }
 0x5a8   : > { %1624 = vrcp.f32 %v997_v44 }
 0x5ab   : > { %v875_v46 = vpop.permute.xlu1 %874 }
 0x5ac   : > { %v880_v47 = vsel %vm630_vm6, %v875_v46, 0 }
 0x5ad   : > { %1430 = vmatpush3.bf16.msra.mxu1 %v880_v47 }
 0x5ae   : > { %1441 = vmatprep.subr.bf16.mxu1 %v1929_v9 }
 0x5b0   : > { %1432 = vmatmul.mubr.msk.bf16.vlgmr.msra.gmra.mrb[16].mxu1 %vm609_vm5, %v873_v49 }
 0x5b1   : > { %1442 = vmatpush3.bf16.msra.mxu1 %v1007_v50  ;;  %1443 = vmatprep.mubr.msk.bf16.mxu1 %vm1930_vm1, %v1929_v9 }
 0x5b2   : > { %v1625_v51 = vpop.eup %1624 }
 0x5b3   : > { %v999_v52 = vmul.f32 %v1625_v51, %v1617_v28 }
 0x5b5   : > { %v1000_v53 = vpack.c.bf16 %v999_v52, %v999_v52 }
 0x5b8   : > { %1444 = vmatmul.mubr.msk.bf16.vlgmr.msra.gmra.mrb[20].mxu1 %vm609_vm5, %v1000_v53 }
 0x656   : > { %v668_v54 = vpop.f32.mrb[8].mxu1 }
 0x657   : > { %v674_v55 = vpack.c.bf16 %v668_v54, %v668_v54  ;;  %v1409_v56 = vpop.f32.mrb[9].mxu1 }
 0x658   : > { %v671_v57 = vpop.f32.mrb[10].mxu1 }
 0x659   : > { %676 = vst.msk [vmem:[#allocation5] sm:$0xf] %vm675_vm7, %v674_v55  ;;  %v1410_v58 = vpop.f32.mrb[11].mxu1 }
 0x65e   : > { %v789_v59 = vpop.f32.mrb[12].mxu1 }
 0x65f   : > { %v1353_v60 = vpack.c.bf16 %v789_v59, %v789_v59  ;;  %v1421_v61 = vpop.f32.mrb[13].mxu1 }
 0x660   : > { %v792_v62 = vpop.f32.mrb[14].mxu1 }
 0x661   : > { %799 = vrot.lane.b32.xlu1 %v1353_v60, %s1936_s14  ;;  %v1422_v63 = vpop.f32.mrb[15].mxu1 }
 0x683   : > { %v916_v4 = vpop.f32.mrb[16].mxu1 }
 0x684   : > { %v1354_v5 = vpack.c.bf16 %v916_v4, %v916_v4  ;;  %v1433_v6 = vpop.f32.mrb[17].mxu1 }
 0x685   : > { %v919_v7 = vpop.f32.mrb[18].mxu1 }
 0x686   : > { %926 = vrot.lane.b32.xlu0 %v1354_v5, %s1937_s1  ;;  %v1434_v8 = vpop.f32.mrb[19].mxu1 }
 0x68b   : > { %v1043_v10 = vpop.f32.mrb[20].mxu1 }
 0x68c   : > { %v1355_v11 = vpack.c.bf16 %v1043_v10, %v1043_v10  ;;  %v1445_v12 = vpop.f32.mrb[21].mxu1 }
 0x68d   : > { %v1046_v13 = vpop.f32.mrb[22].mxu1 }
 0x68e   : > { %1053 = vrot.lane.b32.xlu1 %v1355_v11, %s1934_s10  ;;  %v1446_v14 = vpop.f32.mrb[23].mxu1  ;;  %s1830_s10 = scalar_lea.vmem %s1829_s3, 256 }
 0x68f   : > { %p1832_p13 = scmp.lt.s32.totalorder %s1830_s10, %s1824_s8 }
 0x691   : > { %p1833_p2 = por %p1832_p13, %p1831_p10 }
 0x693   : > { %p1834_p8 = pnand %p1833_p2, %p1827_p7 }
 0x6d3   : > { %v800_v15 = vpop.permute.xlu1 %799 }
 0x6d4   : > { %803 = vst.msk [vmem:[#allocation5] sm:$0xf] %vm802_vm8, %v800_v15 }
 0x6f8   : > { %v927_v9 = vpop.permute.xlu0 %926 }
 0x6f9   : > { %930 = vst.msk [vmem:[#allocation5] sm:$0xf] %vm929_vm9, %v927_v9 }
 0x700   : > { %v1054_v16 = vpop.permute.xlu1 %1053 }
 0x701   : > { %1057 = vst.msk [vmem:[#allocation5] sm:$0xf] %vm1056_vm10, %v1054_v16 }
 0x708   : > { %v1058_v17 = vld [vmem:[#allocation5] sm:$0xf] }
 0x709   : > { %1456 = vmatmul.mubr.msk.bf16.vlgmr.msra.gmra.mrb[16].mxu0 %vm1098_vm11, %v1058_v17 }
 0x7dc   : > { %v1136_v19 = vpop.f32.mrb[16].mxu0 }
 0x7dd   : > { %v1137_v20 = vadd.f32 %v1343_v18, %v1136_v19  ;;  %v1457_v21 = vpop.f32.mrb[17].mxu0 }
 0x7de   : > { %v1139_v22 = vpop.f32.mrb[18].mxu0 }
 0x7df   : > { %v1458_v23 = vpop.f32.mrb[19].mxu0  ;;  %1142 = vst.msk [vmem:[%s388_s19] sm:$0xff] %vm396_vm0, %v1137_v20 }
 0x7e0   : > { %1837 = shalt.err (!%p1834_p8)
}
 0x7e1   : > { %s1838_s20 = scalar_lea.hbm %s2357_s18, 128  ;;  %s1842_s1 = scalar_lea.hbm %s2414_s7, 256 }
 0x7e2   : > { %p1839_p9 = scmp.ne.s32.totalorder %s2357_s18, %s1838_s20  ;;  %p1843_p3 = scmp.lt.u32.totalorder %s2357_s18, %s2414_s7 }
 0x7e3   : > { %p1844_p1 = scmp.lt.u32.totalorder %s1842_s1, %s1838_s20  ;;  %p1846_p11 = scmp.lt.u32.totalorder %s1838_s20, %s2357_s18 }
 0x7e4   : > { %p1840_p4 = pnand %p1839_p9, %p2437_p0 }
 0x7e5   : > { %p1845_p12 = por %p1844_p1, %p1843_p3 }
 0x7e6   : > { %p1841_p6 = pneg %p1840_p4 }
 0x7e7   : > { %p1847_p5 = por %p1846_p11, %p1845_p12 }
 0x7e9   : > { %p1848_p7 = pnand %p1847_p5, %p1841_p6 }
 0x7eb   : > { %1851 = shalt.err (!%p1848_p7)
}
 0x7ec   : > { %1485 = dma.vmem_to_hbm [thread:$0]  (%p2437_p0), %s2359_s30, 128, %s2357_s18, %s1144_s27  }
 0x7ed PF: > { %s1170_s19 = sand.u32 1, %s1898_s24   ;;  %p2438_p10 = scmp.ne.s32.totalorder %s2433_s15, 0 }
 0x7ee   : > { %p2439_p13 = scmp.ge.s32.totalorder %s1918_s29, 2  ;;  %s1171_s13 = scalar_lea.sflag [#allocation8], %s1170_s19 }
 0x7f0   : > { %p1511_p2 = pnand %p2439_p13, %p2438_p10 }
 0x7f2   : > { %1893 = dma.done.wait (!%p1511_p2), %s1171_s13, 128  }
 0x7f3   : > { %1895 = vsyncadd (!%p1511_p2), %s1171_s13, 4294967168  ;;  %s26_s29 = sadd.s32 1, %s1918_s29   ;;  %s2440_s24 = smov %s1902_s25 }
 0x7f4   : > { %p23_p8 = scmp.ge.s32.totalorder %s26_s29, 4   ;;  %s2441_s25 = smov %s1906_s26 }
 0x7f5   : > { %s2442_s26 = smov %s2193_s12  ;;  %s2443_s27 = smov %s1914_s28 }
 0x7f6   : > { %s2444_s28 = smov %s2446_s21  ;;  %25 = sbr.rel (!%p23_p8) target bundleno = 12 (0xc), region = 122 }
 0x7fd   :  { %1176 = vsyncpa [#allocation7], 1 }
 0x7fe   :  { %1178 = vsyncpa [#allocation7 + $0x1], 1 }
 0x7ff   :  { %1179 = vsyncpa [#allocation10], 1 }
 0x800   :  { %1180 = vsyncpa [#allocation13], 1 }
 0x801   :  { %1181 = vsyncpa [#allocation16], 1 }
 0x802   :  { %1182 = vsyncpa [#allocation8], 1 }
 0x803   :  { %1184 = vsyncpa [#allocation8 + $0x1], 1 }

</bundles_post_ra>
